<compile_context>
chip_gen: v5e
topology: v5e:2x2
jax: 0.10.0
libtpu: 0.0.40
codegen_flags: <defaults>
</compile_context>

<pallas_src>
import jax
import jax.numpy as jnp
from jax.experimental import pallas as pl
from jax.experimental.pallas import tpu as pltpu

NUM_CLASSES = 23
_LANE = 128
# Max pixels per spatial tile.  Output block = 23 * 131072 * 4 B ~= 11.5 MiB;
# double-buffered ~23 MiB + ~1 MiB input buffers -> fits v7x's 64 MiB VMEM
# (and trivially v5e/v6e's 128 MiB) while amortizing per-step overhead.
_MAX_TILE = 128 * 1024
# Once a single tile would exceed this, split into >= 2 tiles so the
# "parallel" grid axis can shard across two TensorCores (v7x megacore).
_MIN_SPLIT_TILE = 32 * 1024
# Below this many pixels, skip Pallas entirely (launch overhead dominates).
_SMALL_FALLBACK_PIXELS = 4096


def _one_hot_kernel(t_ref, o_ref):
    """One grid step: emit all NUM_CLASSES one-hot rows for this spatial tile.

    Semantics (matching the PyTorch __init__):
      t[t == -1] = 1
      out[c, p] = 1.0 if t[p] == c else 0.0
    """
    t = t_ref[...]                                   # (1, tile) int32
    t = jnp.where(t == -1, 1, t)                     # remap once per tile
    classes = jax.lax.broadcasted_iota(jnp.int32, o_ref.shape, 0)  # (23, tile)
    o_ref[...] = (classes == t).astype(jnp.float32)  # broadcast (1,tile)->(23,tile)


def _one_hot_xla(target_image: jax.Array) -> jax.Array:
    """Small-input fallback: plain XLA one-hot, no kernel launch."""
    t = target_image.astype(jnp.int32)
    t = jnp.where(t == -1, 1, t)
    cls = jnp.arange(NUM_CLASSES, dtype=jnp.int32)[:, None, None]
    return (cls == t[None, :, :]).astype(jnp.float32)[None, ...]


def dummy_segmentation_prediction(target_image: jax.Array) -> jax.Array:
    """Builds the (1, 23, H, W) float32 one-hot prediction via a Pallas kernel."""
    H, W = target_image.shape
    n = H * W

    if n < _SMALL_FALLBACK_PIXELS:
        # Kernel launch + DMA setup would dominate for a few KB of data.
        return _one_hot_xla(target_image)

    # ---- Balanced, lane-aligned tiling of the flattened spatial axis -------
    n_lane = pl.cdiv(n, _LANE) * _LANE
    num_tiles = pl.cdiv(n_lane, _MAX_TILE)
    if num_tiles == 1 and n_lane >= 2 * _MIN_SPLIT_TILE:
        # Large enough to split: give the megacore / dual-TC parts >= 2 steps.
        num_tiles = 2
    tile = pl.cdiv(pl.cdiv(n_lane, num_tiles), _LANE) * _LANE
    n_pad = tile * num_tiles                        # padding < 128*num_tiles cols

    t_flat = target_image.astype(jnp.int32).reshape(1, n)
    if n_pad != n:
        # Pad value is irrelevant: padded columns are sliced off below.
        t_flat = jnp.pad(t_flat, ((0, 0), (0, n_pad - n)))

    # ---- Right-sized VMEM budget: 2 output + 2 input buffers + slack -------
    out_block_bytes = NUM_CLASSES * tile * 4
    in_block_bytes = tile * 4
    vmem_bytes = 2 * (out_block_bytes + in_block_bytes) + (2 << 20)
    vmem_bytes = max(4 << 20, min(vmem_bytes, 32 << 20))

    cost = pl.CostEstimate(
        flops=2 * NUM_CLASSES * n_pad,
        transcendentals=0,
        bytes_accessed=NUM_CLASSES * n_pad * 4 + n_pad * 4,
    )

    pred_flat = pl.pallas_call(
        _one_hot_kernel,
        out_shape=jax.ShapeDtypeStruct((NUM_CLASSES, n_pad), jnp.float32),
        grid_spec=pl.GridSpec(
            grid=(num_tiles,),
            in_specs=[pl.BlockSpec((1, tile), lambda i: (0, i))],
            out_specs=pl.BlockSpec((NUM_CLASSES, tile), lambda i: (0, i)),
        ),
        compiler_params=pltpu.CompilerParams(
            dimension_semantics=("parallel",),
            vmem_limit_bytes=vmem_bytes,
        ),
        cost_estimate=cost,
    )(t_flat)

    if n_pad == n:
        # No padding: reshape is a free bitcast, no extra HBM round-trip.
        pred_chw = pred_flat.reshape(NUM_CLASSES, H, W)
    else:
        # Non-128-aligned H*W: the slice materializes a copy of the 23-plane
        # tensor; acceptable on this one-time __init__ path.
        pred_chw = pred_flat[:, :n].reshape(NUM_CLASSES, H, W)
    return pred_chw[None, ...]


class DummySegmentationModel:
    """JAX/Pallas mirror of the PyTorch DummySegmentationModel."""

    def __init__(self, target_image: jax.Array):
        # Prediction is fixed at construction time, exactly like the nn.Module.
        self.prediction = dummy_segmentation_prediction(target_image)

    def forward(self, x: jax.Array) -> jax.Array:
        # The PyTorch forward ignores x and returns the cached prediction as
        # float; the cache is already float32, so no astype/copy is needed.
        del x
        return self.prediction

    __call__ = forward


def _reference(target_image: jax.Array) -> jax.Array:
    t_fixed = jnp.where(target_image == -1, 1, target_image)
    ref = jax.nn.one_hot(t_fixed, NUM_CLASSES, dtype=jnp.float32)   # (H, W, 23)
    return jnp.transpose(ref, (2, 0, 1))[None, ...]                 # (1, 23, H, W)


if __name__ == "__main__":
    key = jax.random.PRNGKey(0)
    k_t, k_x, k_t2, k_t3, k_t4 = jax.random.split(key, 5)

    # --- Main Pallas path: 64x64 = 4096 pixels, 128-aligned (no padding). ---
    H, W = 64, 64
    target_image = jax.random.randint(
        k_t, (H, W), minval=-1, maxval=NUM_CLASSES, dtype=jnp.int32
    )
    # Dummy input x (ignored by the forward pass, as in the reference module).
    x = jax.random.normal(k_x, (2, 4, H, W), dtype=jnp.float32)

    model = DummySegmentationModel(target_image)
    out = model(x)
    out = jax.block_until_ready(out)

    assert out.shape == (1, NUM_CLASSES, H, W), out.shape
    assert out.dtype == jnp.float32, out.dtype
    assert bool(jnp.array_equal(out, _reference(target_image)))

    # --- Pallas path with non-128-aligned spatial size (pad + slice). -------
    H2, W2 = 67, 95
    target_image2 = jax.random.randint(
        k_t2, (H2, W2), minval=-1, maxval=NUM_CLASSES, dtype=jnp.int32
    )
    out2 = jax.block_until_ready(dummy_segmentation_prediction(target_image2))
    assert out2.shape == (1, NUM_CLASSES, H2, W2), out2.shape
    assert bool(jnp.array_equal(out2, _reference(target_image2)))

    # --- Pallas path with a multi-tile grid (>= 2 "parallel" steps). --------
    H3, W3 = 256, 256
    target_image3 = jax.random.randint(
        k_t3, (H3, W3), minval=-1, maxval=NUM_CLASSES, dtype=jnp.int32
    )
    out3 = jax.block_until_ready(dummy_segmentation_prediction(target_image3))
    assert out3.shape == (1, NUM_CLASSES, H3, W3), out3.shape
    assert bool(jnp.array_equal(out3, _reference(target_image3)))

    # --- Tiny-image fallback path (no kernel launch). -----------------------
    H4, W4 = 16, 16
    target_image4 = jax.random.randint(
        k_t4, (H4, W4), minval=-1, maxval=NUM_CLASSES, dtype=jnp.int32
    )
    out4 = jax.block_until_ready(dummy_segmentation_prediction(target_image4))
    assert out4.shape == (1, NUM_CLASSES, H4, W4), out4.shape
    assert bool(jnp.array_equal(out4, _reference(target_image4)))

    print("KERNEL_OK")
</pallas_src>

<mosaic_0001>
module attributes {stable_mosaic.version = 11 : i64} {
  func.func @_one_hot_kernel(%arg0: i32, %arg1: memref<1x4096xi32, #tpu.memory_space<vmem>>, %arg2: memref<23x4096xf32, #tpu.memory_space<vmem>>) attributes {dimension_semantics = [#tpu.dimension_semantics<parallel>], iteration_bounds = array<i64: 1>, scalar_prefetch = 0 : i64, scratch_operands = 0 : i64, tpu.core_type = #tpu.core_type<tc>, window_params = [{transform_indices = @transform_0, window_bounds = array<i64: 1, 4096>}, {transform_indices = @transform_1, window_bounds = array<i64: 23, 4096>}]} {
    %c0 = arith.constant 0 : index
    %c0_0 = arith.constant 0 : index
    %0 = vector.load %arg1[%c0, %c0_0] : memref<1x4096xi32, #tpu.memory_space<vmem>>, vector<1x4096xi32>
    %c-1_i32 = arith.constant -1 : i32
    %1 = vector.broadcast %c-1_i32 : i32 to vector<1x4096xi32>
    %2 = arith.cmpi eq, %0, %1 : vector<1x4096xi32>
    %c1_i32 = arith.constant 1 : i32
    %3 = vector.broadcast %c1_i32 : i32 to vector<1x4096xi32>
    %4 = arith.select %2, %3, %0 : vector<1x4096xi1>, vector<1x4096xi32>
    %5 = tpu.iota {dimensions = array<i32: 0>} : vector<23x4096xi32>
    %6 = vector.broadcast %4 : vector<1x4096xi32> to vector<23x4096xi32>
    %7 = arith.cmpi eq, %5, %6 : vector<23x4096xi32>
    %8 = arith.extui %7 : vector<23x4096xi1> to vector<23x4096xi32>
    %9 = arith.sitofp %8 : vector<23x4096xi32> to vector<23x4096xf32>
    %c0_1 = arith.constant 0 : index
    %c0_2 = arith.constant 0 : index
    %10 = vector.load %arg2[%c0_1, %c0_2] : memref<23x4096xf32, #tpu.memory_space<vmem>>, vector<23x4096xf32>
    tpu.vector_store %arg2[%c0_1, %c0_2], %9 {strides = array<i32>} : memref<23x4096xf32, #tpu.memory_space<vmem>>, vector<23x4096xf32>,
    return
  }
  func.func @transform_0(%arg0: i32) -> (i32, i32) {
    %c0_i32 = arith.constant 0 : i32
    %c0_i32_0 = arith.constant 0 : i32
    return %c0_i32, %arg0 : i32, i32
  }
  func.func @transform_1(%arg0: i32) -> (i32, i32) {
    %c0_i32 = arith.constant 0 : i32
    %c0_i32_0 = arith.constant 0 : i32
    return %c0_i32, %arg0 : i32, i32
  }
}

</mosaic_0001>

<bundles_post_ra>
// kernel: tpu_custom_call.1
= control target key start
LH: loop header
LB: loop body
LE: loop exit
PB: predicated region body
PF: predicated region fallthrough
CT: control target
= control target key end

     0   :  { %6 = vsyncpa [#allocation3], 0  ;;  %s1090_s0 = inlined_call_operand.hbm [shape: s32[1,4096], index: 0, kind: input, shape index: {}]   ;;  %s1091_s1 = inlined_call_operand.hbm [shape: f32[23,4096], index: 1, kind: output, shape index: {}]  }
   0x1   :  { %7 = vsyncpa [#allocation4], 0  ;;  %s13_s8 = sshll.u32 %s1090_s0, 4  ;;  %s627_s9 = smov [#allocation2]   ;;  %s14_s8 = int_to_ptr.hbm [resolvable:$true] %s13_s8 }
   0x2   :  { %s15_s10 = sshll.u32 %s627_s9, 4  ;;  %s16_s10 = int_to_ptr.vmem [resolvable:$true] %s15_s10 }
   0x3   :  { %18 = dma.hbm_to_vmem [thread:$0]  %s14_s8, 512, %s16_s10, [#allocation3]  }
   0x4   :  { %623 = dma.done.wait [#allocation3], 512  }
   0x5   :  { %624 = vsyncadd [#allocation3], 4294966784  ;;  %v35_v0 = vlaneseq  ;;  %v23_v1 = vld [vmem:[#allocation2] sm:$0xff]  ;;  %v24_v2 = vld [vmem:[#allocation2 + $0x8] sm:$0xff]  ;;  %v628_v15 = vmov 0.0   ;;  %s629_s0 = smov [#allocation5]  }
   0x6   :  { %vm27_vm0 = vcmp.eq.s32.totalorder %v23_v1, 4294967295  ;;  %vm28_vm1 = vcmp.eq.s32.totalorder %v24_v2, 4294967295  ;;  %v25_v14 = vld [vmem:[#allocation2 + $0x10] sm:$0xff]  ;;  %v26_v40 = vld [vmem:[#allocation2 + $0x18] sm:$0xff]  ;;  %s459_s11 = sshll.u32 %s629_s0, 4  ;;  %s461_s14 = sshll.u32 %s1091_s1, 4  ;;  %s460_s11 = int_to_ptr.vmem [resolvable:$true] %s459_s11  ;;  %s462_s14 = int_to_ptr.hbm [resolvable:$true] %s461_s14 }
   0x7   :  { %v31_v3 = vsel %vm27_vm0, 1, %v23_v1  ;;  %v645_v4 = vshrl.u32 %v35_v0, 7  ;;  %v32_v5 = vsel %vm28_vm1, 1, %v24_v2  ;;  %vm29_vm10 = vcmp.eq.s32.totalorder %v25_v14, 4294967295  ;;  %s630_s15 = smov 4096   ;;  %s631_s16 = smov 256  }
   0x8   :  { %v647_v6 = vperm.slane %v31_v3, 0  ;;  %v649_v7 = vperm.slane %v31_v3, 1  ;;  %v651_v8 = vperm.slane %v31_v3, 2  ;;  %v653_v9 = vperm.slane %v31_v3, 3 }
   0x9   :  { %v655_v10 = vperm.slane %v31_v3, 4  ;;  %v657_v11 = vperm.slane %v31_v3, 5  ;;  %v659_v12 = vperm.slane %v31_v3, 6  ;;  %v661_v13 = vperm.slane %v31_v3, 7 }
   0xa   :  { %vm71_vm2 = vcmp.eq.s32.totalorder %v645_v4, %v647_v6  ;;  %vm72_vm3 = vcmp.eq.s32.totalorder %v645_v4, %v649_v7  ;;  %vm73_vm4 = vcmp.eq.s32.totalorder %v645_v4, %v651_v8  ;;  %vm74_vm5 = vcmp.eq.s32.totalorder %v645_v4, %v653_v9 }
   0xb   :  { %v474_v16 = vsel %vm71_vm2, 1.0, %v628_v15  ;;  %v475_v17 = vsel %vm72_vm3, 1.0, %v628_v15  ;;  %v476_v18 = vsel %vm73_vm4, 1.0, %v628_v15  ;;  %v477_v19 = vsel %vm74_vm5, 1.0, %v628_v15 }
   0xc   :  { %359 = vst [vmem:[#allocation5] sm:$0xff] %v474_v16  ;;  %vm75_vm6 = vcmp.eq.s32.totalorder %v645_v4, %v655_v10  ;;  %vm76_vm7 = vcmp.eq.s32.totalorder %v645_v4, %v657_v11  ;;  %vm77_vm8 = vcmp.eq.s32.totalorder %v645_v4, %v659_v12  ;;  %vm78_vm9 = vcmp.eq.s32.totalorder %v645_v4, %v661_v13 }
   0xd   :  { %360 = vst [vmem:[#allocation5 + $0x8] sm:$0xff] %v475_v17  ;;  %v478_v20 = vsel %vm75_vm6, 1.0, %v628_v15  ;;  %v479_v21 = vsel %vm76_vm7, 1.0, %v628_v15  ;;  %v480_v22 = vsel %vm77_vm8, 1.0, %v628_v15  ;;  %v686_v23 = vperm.slane %v32_v5, 0 }
   0xe   :  { %361 = vst [vmem:[#allocation5 + $0x10] sm:$0xff] %v476_v18  ;;  %v688_v24 = vperm.slane %v32_v5, 1  ;;  %v690_v25 = vperm.slane %v32_v5, 2  ;;  %v692_v26 = vperm.slane %v32_v5, 3  ;;  %v481_v27 = vsel %vm78_vm9, 1.0, %v628_v15 }
   0xf   :  { %362 = vst [vmem:[#allocation5 + $0x18] sm:$0xff] %v477_v19  ;;  %v695_v28 = vperm.slane %v32_v5, 4  ;;  %v697_v29 = vperm.slane %v32_v5, 5  ;;  %v699_v30 = vperm.slane %v32_v5, 6  ;;  %vm79_vm11 = vcmp.eq.s32.totalorder %v645_v4, %v686_v23 }
  0x10   :  { %363 = vst [vmem:[#allocation5 + $0x20] sm:$0xff] %v478_v20  ;;  %vm80_vm12 = vcmp.eq.s32.totalorder %v645_v4, %v688_v24  ;;  %vm81_vm13 = vcmp.eq.s32.totalorder %v645_v4, %v690_v25  ;;  %vm82_vm14 = vcmp.eq.s32.totalorder %v645_v4, %v692_v26  ;;  %v482_v31 = vsel %vm79_vm11, 1.0, %v628_v15 }
  0x11   :  { %364 = vst [vmem:[#allocation5 + $0x28] sm:$0xff] %v479_v21  ;;  %v710_v32 = vperm.slane %v32_v5, 7  ;;  %v33_v33 = vsel %vm29_vm10, 1, %v25_v14  ;;  %v483_v34 = vsel %vm80_vm12, 1.0, %v628_v15  ;;  %vm83_vm15 = vcmp.eq.s32.totalorder %v645_v4, %v695_v28 }
  0x12   :  { %365 = vst [vmem:[#allocation5 + $0x30] sm:$0xff] %v480_v22  ;;  %v484_v35 = vsel %vm81_vm13, 1.0, %v628_v15  ;;  %v485_v36 = vsel %vm82_vm14, 1.0, %v628_v15  ;;  %vm84_vm0 = vcmp.eq.s32.totalorder %v645_v4, %v697_v29  ;;  %vm85_vm1 = vcmp.eq.s32.totalorder %v645_v4, %v699_v30 }
  0x13   :  { %366 = vst [vmem:[#allocation5 + $0x38] sm:$0xff] %v481_v27  ;;  %v722_v37 = vperm.slane %v33_v33, 0  ;;  %v724_v38 = vperm.slane %v33_v33, 1  ;;  %v726_v39 = vperm.slane %v33_v33, 2  ;;  %v486_v41 = vsel %vm83_vm15, 1.0, %v628_v15 }
  0x14   :  { %367 = vst [vmem:[#allocation5 + $0x40] sm:$0xff] %v482_v31  ;;  %vm86_vm2 = vcmp.eq.s32.totalorder %v645_v4, %v710_v32  ;;  %v731_v42 = vperm.slane %v33_v33, 3  ;;  %v487_v43 = vsel %vm84_vm0, 1.0, %v628_v15  ;;  %v736_v44 = vperm.slane %v33_v33, 4 }
  0x15   :  { %368 = vst [vmem:[#allocation5 + $0x48] sm:$0xff] %v483_v34  ;;  %vm87_vm3 = vcmp.eq.s32.totalorder %v645_v4, %v722_v37  ;;  %v488_v45 = vsel %vm85_vm1, 1.0, %v628_v15  ;;  %vm88_vm4 = vcmp.eq.s32.totalorder %v645_v4, %v724_v38  ;;  %v741_v46 = vperm.slane %v33_v33, 5 }
  0x16   :  { %369 = vst [vmem:[#allocation5 + $0x50] sm:$0xff] %v484_v35  ;;  %vm30_vm5 = vcmp.eq.s32.totalorder %v26_v40, 4294967295  ;;  %v489_v47 = vsel %vm86_vm2, 1.0, %v628_v15  ;;  %vm89_vm6 = vcmp.eq.s32.totalorder %v645_v4, %v726_v39  ;;  %v746_v48 = vperm.slane %v33_v33, 6 }
  0x17   :  { %370 = vst [vmem:[#allocation5 + $0x58] sm:$0xff] %v485_v36  ;;  %v490_v49 = vsel %vm87_vm3, 1.0, %v628_v15  ;;  %vm90_vm7 = vcmp.eq.s32.totalorder %v645_v4, %v731_v42  ;;  %v751_v50 = vperm.slane %v33_v33, 7  ;;  %v491_v51 = vsel %vm88_vm4, 1.0, %v628_v15 }
  0x18   :  { %371 = vst [vmem:[#allocation5 + $0x60] sm:$0xff] %v486_v41  ;;  %vm91_vm8 = vcmp.eq.s32.totalorder %v645_v4, %v736_v44  ;;  %v34_v52 = vsel %vm30_vm5, 1, %v26_v40  ;;  %v492_v53 = vsel %vm89_vm6, 1.0, %v628_v15  ;;  %vm92_vm9 = vcmp.eq.s32.totalorder %v645_v4, %v741_v46 }
  0x19   :  { %372 = vst [vmem:[#allocation5 + $0x68] sm:$0xff] %v487_v43  ;;  %v759_v54 = vperm.slane %v34_v52, 0  ;;  %v761_v55 = vperm.slane %v34_v52, 1  ;;  %v493_v56 = vsel %vm90_vm7, 1.0, %v628_v15  ;;  %vm93_vm10 = vcmp.eq.s32.totalorder %v645_v4, %v746_v48 }
  0x1a   :  { %373 = vst [vmem:[#allocation5 + $0x70] sm:$0xff] %v488_v45  ;;  %v766_v57 = vperm.slane %v34_v52, 2  ;;  %v494_v58 = vsel %vm91_vm8, 1.0, %v628_v15  ;;  %vm94_vm11 = vcmp.eq.s32.totalorder %v645_v4, %v751_v50  ;;  %v771_v59 = vperm.slane %v34_v52, 3 }
  0x1b   :  { %374 = vst [vmem:[#allocation5 + $0x78] sm:$0xff] %v489_v47  ;;  %v495_v60 = vsel %vm92_vm9, 1.0, %v628_v15  ;;  %vm95_vm12 = vcmp.eq.s32.totalorder %v645_v4, %v759_v54  ;;  %v776_v61 = vperm.slane %v34_v52, 4  ;;  %v496_v62 = vsel %vm93_vm10, 1.0, %v628_v15 }
  0x1c   :  { %375 = vst [vmem:[#allocation5 + $0x80] sm:$0xff] %v490_v49  ;;  %vm96_vm13 = vcmp.eq.s32.totalorder %v645_v4, %v761_v55  ;;  %v781_v63 = vperm.slane %v34_v52, 5  ;;  %v497_v0 = vsel %vm94_vm11, 1.0, %v628_v15  ;;  %vm97_vm14 = vcmp.eq.s32.totalorder %v645_v4, %v766_v57 }
  0x1d   :  { %376 = vst [vmem:[#allocation5 + $0x88] sm:$0xff] %v491_v51  ;;  %v786_v1 = vperm.slane %v34_v52, 6  ;;  %v498_v2 = vsel %vm95_vm12, 1.0, %v628_v15  ;;  %vm98_vm15 = vcmp.eq.s32.totalorder %v645_v4, %v771_v59  ;;  %v791_v3 = vperm.slane %v34_v52, 7 }
  0x1e   :  { %377 = vst [vmem:[#allocation5 + $0x90] sm:$0xff] %v492_v53  ;;  %v499_v5 = vsel %vm96_vm13, 1.0, %v628_v15  ;;  %vm99_vm0 = vcmp.eq.s32.totalorder %v645_v4, %v776_v61  ;;  %v797_v14 = vadd.s32 8, %v645_v4  ;;  %v500_v16 = vsel %vm97_vm14, 1.0, %v628_v15 }
  0x1f   :  { %378 = vst [vmem:[#allocation5 + $0x98] sm:$0xff] %v493_v56  ;;  %vm100_vm1 = vcmp.eq.s32.totalorder %v645_v4, %v781_v63  ;;  %v501_v17 = vsel %vm98_vm15, 1.0, %v628_v15  ;;  %vm101_vm2 = vcmp.eq.s32.totalorder %v645_v4, %v786_v1  ;;  %v502_v18 = vsel %vm99_vm0, 1.0, %v628_v15 }
  0x20   :  { %379 = vst [vmem:[#allocation5 + $0xa0] sm:$0xff] %v494_v58  ;;  %vm102_vm3 = vcmp.eq.s32.totalorder %v645_v4, %v791_v3  ;;  %v503_v19 = vsel %vm100_vm1, 1.0, %v628_v15  ;;  %vm103_vm4 = vcmp.eq.s32.totalorder %v797_v14, %v647_v6  ;;  %v504_v20 = vsel %vm101_vm2, 1.0, %v628_v15 }
  0x21   :  { %380 = vst [vmem:[#allocation5 + $0xa8] sm:$0xff] %v495_v60  ;;  %vm104_vm5 = vcmp.eq.s32.totalorder %v797_v14, %v649_v7  ;;  %v505_v21 = vsel %vm102_vm3, 1.0, %v628_v15  ;;  %vm105_vm6 = vcmp.eq.s32.totalorder %v797_v14, %v651_v8  ;;  %vm106_vm7 = vcmp.eq.s32.totalorder %v797_v14, %v653_v9 }
  0x22   :  { %381 = vst [vmem:[#allocation5 + $0xb0] sm:$0xff] %v496_v62  ;;  %vm107_vm8 = vcmp.eq.s32.totalorder %v797_v14, %v655_v10  ;;  %v506_v22 = vsel %vm103_vm4, 1.0, %v628_v15  ;;  %vm108_vm9 = vcmp.eq.s32.totalorder %v797_v14, %v657_v11  ;;  %vm109_vm10 = vcmp.eq.s32.totalorder %v797_v14, %v659_v12 }
  0x23   :  { %382 = vst [vmem:[#allocation5 + $0xb8] sm:$0xff] %v497_v0  ;;  %vm110_vm11 = vcmp.eq.s32.totalorder %v797_v14, %v661_v13  ;;  %v507_v27 = vsel %vm104_vm5, 1.0, %v628_v15  ;;  %v508_v31 = vsel %vm105_vm6, 1.0, %v628_v15  ;;  %v509_v33 = vsel %vm106_vm7, 1.0, %v628_v15 }
  0x24   :  { %383 = vst [vmem:[#allocation5 + $0xc0] sm:$0xff] %v498_v2  ;;  %v510_v34 = vsel %vm107_vm8, 1.0, %v628_v15  ;;  %vm111_vm12 = vcmp.eq.s32.totalorder %v797_v14, %v686_v23  ;;  %v511_v35 = vsel %vm108_vm9, 1.0, %v628_v15  ;;  %v512_v36 = vsel %vm109_vm10, 1.0, %v628_v15 }
  0x25   :  { %384 = vst [vmem:[#allocation5 + $0xc8] sm:$0xff] %v499_v5  ;;  %v513_v40 = vsel %vm110_vm11, 1.0, %v628_v15  ;;  %vm112_vm13 = vcmp.eq.s32.totalorder %v797_v14, %v688_v24  ;;  %vm113_vm14 = vcmp.eq.s32.totalorder %v797_v14, %v690_v25  ;;  %vm114_vm15 = vcmp.eq.s32.totalorder %v797_v14, %v692_v26 }
  0x26   :  { %385 = vst [vmem:[#allocation5 + $0xd0] sm:$0xff] %v500_v16  ;;  %vm115_vm0 = vcmp.eq.s32.totalorder %v797_v14, %v695_v28  ;;  %vm116_vm1 = vcmp.eq.s32.totalorder %v797_v14, %v697_v29  ;;  %v514_v41 = vsel %vm111_vm12, 1.0, %v628_v15  ;;  %vm117_vm2 = vcmp.eq.s32.totalorder %v797_v14, %v699_v30 }
  0x27   :  { %386 = vst [vmem:[#allocation5 + $0xd8] sm:$0xff] %v501_v17  ;;  %vm118_vm3 = vcmp.eq.s32.totalorder %v797_v14, %v710_v32  ;;  %vm119_vm4 = vcmp.eq.s32.totalorder %v797_v14, %v722_v37  ;;  %v515_v43 = vsel %vm112_vm13, 1.0, %v628_v15  ;;  %vm120_vm5 = vcmp.eq.s32.totalorder %v797_v14, %v724_v38 }
  0x28   :  { %387 = vst [vmem:[#allocation5 + $0xe0] sm:$0xff] %v502_v18  ;;  %vm121_vm6 = vcmp.eq.s32.totalorder %v797_v14, %v726_v39  ;;  %vm122_vm7 = vcmp.eq.s32.totalorder %v797_v14, %v731_v42  ;;  %v516_v45 = vsel %vm113_vm14, 1.0, %v628_v15  ;;  %v517_v47 = vsel %vm114_vm15, 1.0, %v628_v15 }
  0x29   :  { %388 = vst [vmem:[#allocation5 + $0xe8] sm:$0xff] %v503_v19  ;;  %v518_v49 = vsel %vm115_vm0, 1.0, %v628_v15  ;;  %v519_v51 = vsel %vm116_vm1, 1.0, %v628_v15  ;;  %v520_v52 = vsel %vm117_vm2, 1.0, %v628_v15  ;;  %v521_v53 = vsel %vm118_vm3, 1.0, %v628_v15 }
  0x2a   :  { %389 = vst [vmem:[#allocation5 + $0xf0] sm:$0xff] %v504_v20  ;;  %v522_v56 = vsel %vm119_vm4, 1.0, %v628_v15  ;;  %v869_v58 = vadd.s32 16, %v645_v4  ;;  %v523_v60 = vsel %vm120_vm5, 1.0, %v628_v15  ;;  %v524_v62 = vsel %vm121_vm6, 1.0, %v628_v15 }
  0x2b   :  { %390 = vst [vmem:[#allocation5 + $0xf8] sm:$0xff] %v505_v21  ;;  %v874_v0 = vsel %vm122_vm7, 1.0, %v628_v15  ;;  %vm123_vm8 = vcmp.eq.s32.totalorder %v797_v14, %v736_v44  ;;  %vm124_vm9 = vcmp.eq.s32.totalorder %v797_v14, %v741_v46 }
  0x2c   :  { %391 = vst [vmem:[#allocation5 + $0x100] sm:$0xff] %v506_v22  ;;  %vm135_vm10 = vcmp.eq.s32.totalorder %v869_v58, %v647_v6  ;;  %vm136_vm11 = vcmp.eq.s32.totalorder %v869_v58, %v649_v7  ;;  %vm137_vm12 = vcmp.eq.s32.totalorder %v869_v58, %v651_v8  ;;  %vm138_vm13 = vcmp.eq.s32.totalorder %v869_v58, %v653_v9 }
  0x2d   :  { %392 = vst [vmem:[#allocation5 + $0x108] sm:$0xff] %v507_v27  ;;  %v889_v4 = vsel %vm135_vm10, 1.0, %v628_v15  ;;  %v892_v2 = vsel %vm136_vm11, 1.0, %v628_v15  ;;  %v895_v5 = vsel %vm137_vm12, 1.0, %v628_v15  ;;  %v898_v6 = vsel %vm138_vm13, 1.0, %v628_v15 }
  0x2e   :  { %393 = vst [vmem:[#allocation5 + $0x110] sm:$0xff] %v508_v31  ;;  %vm139_vm14 = vcmp.eq.s32.totalorder %v869_v58, %v655_v10  ;;  %vm140_vm15 = vcmp.eq.s32.totalorder %v869_v58, %v657_v11  ;;  %vm141_vm0 = vcmp.eq.s32.totalorder %v869_v58, %v659_v12  ;;  %vm142_vm1 = vcmp.eq.s32.totalorder %v869_v58, %v661_v13 }
  0x2f   :  { %394 = vst [vmem:[#allocation5 + $0x118] sm:$0xff] %v509_v33  ;;  %v909_v7 = vsel %vm139_vm14, 1.0, %v628_v15  ;;  %v912_v8 = vsel %vm140_vm15, 1.0, %v628_v15  ;;  %v915_v9 = vsel %vm141_vm0, 1.0, %v628_v15  ;;  %v918_v10 = vsel %vm142_vm1, 1.0, %v628_v15 }
  0x30   :  { %395 = vst [vmem:[#allocation5 + $0x120] sm:$0xff] %v510_v34  ;;  %vm143_vm2 = vcmp.eq.s32.totalorder %v869_v58, %v686_v23  ;;  %vm144_vm3 = vcmp.eq.s32.totalorder %v869_v58, %v688_v24  ;;  %vm145_vm4 = vcmp.eq.s32.totalorder %v869_v58, %v690_v25  ;;  %vm146_vm5 = vcmp.eq.s32.totalorder %v869_v58, %v692_v26 }
  0x31   :  { %396 = vst [vmem:[#allocation5 + $0x128] sm:$0xff] %v511_v35  ;;  %v929_v11 = vsel %vm143_vm2, 1.0, %v628_v15  ;;  %v932_v12 = vsel %vm144_vm3, 1.0, %v628_v15  ;;  %v935_v13 = vsel %vm145_vm4, 1.0, %v628_v15  ;;  %v938_v23 = vsel %vm146_vm5, 1.0, %v628_v15 }
  0x32   :  { %397 = vst [vmem:[#allocation5 + $0x130] sm:$0xff] %v512_v36  ;;  %vm147_vm6 = vcmp.eq.s32.totalorder %v869_v58, %v695_v28  ;;  %vm148_vm7 = vcmp.eq.s32.totalorder %v869_v58, %v697_v29  ;;  %vm149_vm10 = vcmp.eq.s32.totalorder %v869_v58, %v699_v30  ;;  %vm150_vm11 = vcmp.eq.s32.totalorder %v869_v58, %v710_v32 }
  0x33   :  { %398 = vst [vmem:[#allocation5 + $0x138] sm:$0xff] %v513_v40  ;;  %v949_v24 = vsel %vm147_vm6, 1.0, %v628_v15  ;;  %v952_v25 = vsel %vm148_vm7, 1.0, %v628_v15  ;;  %v955_v26 = vsel %vm149_vm10, 1.0, %v628_v15  ;;  %v958_v28 = vsel %vm150_vm11, 1.0, %v628_v15 }
  0x34   :  { %399 = vst [vmem:[#allocation5 + $0x140] sm:$0xff] %v514_v41  ;;  %vm125_vm12 = vcmp.eq.s32.totalorder %v797_v14, %v746_v48  ;;  %vm151_vm13 = vcmp.eq.s32.totalorder %v869_v58, %v722_v37  ;;  %vm152_vm14 = vcmp.eq.s32.totalorder %v869_v58, %v724_v38  ;;  %vm153_vm15 = vcmp.eq.s32.totalorder %v869_v58, %v726_v39 }
  0x35   :  { %400 = vst [vmem:[#allocation5 + $0x148] sm:$0xff] %v515_v43  ;;  %v969_v29 = vsel %vm151_vm13, 1.0, %v628_v15  ;;  %v972_v30 = vsel %vm152_vm14, 1.0, %v628_v15  ;;  %v975_v32 = vsel %vm153_vm15, 1.0, %v628_v15  ;;  %vm154_vm0 = vcmp.eq.s32.totalorder %v869_v58, %v731_v42 }
  0x36   :  { %401 = vst [vmem:[#allocation5 + $0x150] sm:$0xff] %v516_v45  ;;  %v526_v37 = vsel %vm123_vm8, 1.0, %v628_v15  ;;  %vm126_vm1 = vcmp.eq.s32.totalorder %v797_v14, %v751_v50  ;;  %v986_v38 = vsel %vm154_vm0, 1.0, %v628_v15  ;;  %vm155_vm2 = vcmp.eq.s32.totalorder %v869_v58, %v736_v44 }
  0x37   :  { %402 = vst [vmem:[#allocation5 + $0x158] sm:$0xff] %v517_v47  ;;  %v527_v39 = vsel %vm124_vm9, 1.0, %v628_v15  ;;  %vm127_vm3 = vcmp.eq.s32.totalorder %v797_v14, %v759_v54  ;;  %v997_v42 = vsel %vm155_vm2, 1.0, %v628_v15  ;;  %vm156_vm8 = vcmp.eq.s32.totalorder %v869_v58, %v741_v46 }
  0x38   :  { %403 = vst [vmem:[#allocation5 + $0x160] sm:$0xff] %v518_v49  ;;  %v528_v44 = vsel %vm125_vm12, 1.0, %v628_v15  ;;  %vm128_vm4 = vcmp.eq.s32.totalorder %v797_v14, %v761_v55  ;;  %v1009_v16 = vsel %vm156_vm8, 1.0, %v628_v15  ;;  %vm157_vm9 = vcmp.eq.s32.totalorder %v869_v58, %v746_v48 }
  0x39   :  { %404 = vst [vmem:[#allocation5 + $0x168] sm:$0xff] %v519_v51  ;;  %v529_v17 = vsel %vm126_vm1, 1.0, %v628_v15  ;;  %vm129_vm5 = vcmp.eq.s32.totalorder %v797_v14, %v766_v57  ;;  %v1017_v46 = vsel %vm157_vm9, 1.0, %v628_v15  ;;  %vm158_vm6 = vcmp.eq.s32.totalorder %v869_v58, %v751_v50 }
  0x3a   :  { %405 = vst [vmem:[#allocation5 + $0x170] sm:$0xff] %v520_v52  ;;  %v530_v18 = vsel %vm127_vm3, 1.0, %v628_v15  ;;  %vm130_vm7 = vcmp.eq.s32.totalorder %v797_v14, %v771_v59  ;;  %v561_v48 = vsel %vm158_vm6, 1.0, %v628_v15  ;;  %vm159_vm10 = vcmp.eq.s32.totalorder %v869_v58, %v759_v54 }
  0x3b   :  { %406 = vst [vmem:[#allocation5 + $0x178] sm:$0xff] %v521_v53  ;;  %v531_v19 = vsel %vm128_vm4, 1.0, %v628_v15  ;;  %vm131_vm11 = vcmp.eq.s32.totalorder %v797_v14, %v776_v61  ;;  %v562_v20 = vsel %vm159_vm10, 1.0, %v628_v15  ;;  %vm160_vm12 = vcmp.eq.s32.totalorder %v869_v58, %v761_v55 }
  0x3c   :  { %407 = vst [vmem:[#allocation5 + $0x180] sm:$0xff] %v522_v56  ;;  %v532_v50 = vsel %vm129_vm5, 1.0, %v628_v15  ;;  %vm132_vm13 = vcmp.eq.s32.totalorder %v797_v14, %v781_v63  ;;  %v563_v21 = vsel %vm160_vm12, 1.0, %v628_v15  ;;  %vm161_vm14 = vcmp.eq.s32.totalorder %v869_v58, %v766_v57 }
  0x3d   :  { %408 = vst [vmem:[#allocation5 + $0x188] sm:$0xff] %v523_v60  ;;  %v533_v54 = vsel %vm130_vm7, 1.0, %v628_v15  ;;  %vm133_vm15 = vcmp.eq.s32.totalorder %v797_v14, %v786_v1  ;;  %v564_v22 = vsel %vm161_vm14, 1.0, %v628_v15  ;;  %vm162_vm0 = vcmp.eq.s32.totalorder %v869_v58, %v771_v59 }
  0x3e   :  { %409 = vst [vmem:[#allocation5 + $0x190] sm:$0xff] %v524_v62  ;;  %v534_v55 = vsel %vm131_vm11, 1.0, %v628_v15  ;;  %vm134_vm1 = vcmp.eq.s32.totalorder %v797_v14, %v791_v3  ;;  %v565_v27 = vsel %vm162_vm0, 1.0, %v628_v15  ;;  %vm163_vm2 = vcmp.eq.s32.totalorder %v869_v58, %v776_v61 }
  0x3f   :  { %410 = vst [vmem:[#allocation5 + $0x198] sm:$0xff] %v874_v0  ;;  %v535_v57 = vsel %vm132_vm13, 1.0, %v628_v15  ;;  %v566_v31 = vsel %vm163_vm2, 1.0, %v628_v15  ;;  %vm164_vm3 = vcmp.eq.s32.totalorder %v869_v58, %v781_v63  ;;  %v536_v59 = vsel %vm133_vm15, 1.0, %v628_v15 }
  0x40   :  { %411 = vst [vmem:[#allocation5 + $0x1a0] sm:$0xff] %v526_v37  ;;  %v567_v33 = vsel %vm164_vm3, 1.0, %v628_v15  ;;  %vm165_vm8 = vcmp.eq.s32.totalorder %v869_v58, %v786_v1  ;;  %v537_v14 = vsel %vm134_vm1, 1.0, %v628_v15  ;;  %vm166_vm4 = vcmp.eq.s32.totalorder %v869_v58, %v791_v3 }
  0x41   :  { %412 = vst [vmem:[#allocation5 + $0x1a8] sm:$0xff] %v527_v39  ;;  %v568_v61 = vsel %vm165_vm8, 1.0, %v628_v15  ;;  %v569_v34 = vsel %vm166_vm4, 1.0, %v628_v15 }
  0x42   :  { %413 = vst [vmem:[#allocation5 + $0x1b0] sm:$0xff] %v528_v44 }
  0x43   :  { %414 = vst [vmem:[#allocation5 + $0x1b8] sm:$0xff] %v529_v17 }
  0x44   :  { %415 = vst [vmem:[#allocation5 + $0x1c0] sm:$0xff] %v530_v18 }
  0x45   :  { %416 = vst [vmem:[#allocation5 + $0x1c8] sm:$0xff] %v531_v19 }
  0x46   :  { %417 = vst [vmem:[#allocation5 + $0x1d0] sm:$0xff] %v532_v50 }
  0x47   :  { %418 = vst [vmem:[#allocation5 + $0x1d8] sm:$0xff] %v533_v54 }
  0x48   :  { %419 = vst [vmem:[#allocation5 + $0x1e0] sm:$0xff] %v534_v55 }
  0x49   :  { %420 = vst [vmem:[#allocation5 + $0x1e8] sm:$0xff] %v535_v57 }
  0x4a   :  { %421 = vst [vmem:[#allocation5 + $0x1f0] sm:$0xff] %v536_v59 }
  0x4b   :  { %422 = vst [vmem:[#allocation5 + $0x1f8] sm:$0xff] %v537_v14 }
  0x4c   :  { %423 = vst [vmem:[#allocation5 + $0x200] sm:$0x7f] %v889_v4 }
  0x4d   :  { %424 = vst [vmem:[#allocation5 + $0x208] sm:$0x7f] %v892_v2 }
  0x4e   :  { %425 = vst [vmem:[#allocation5 + $0x210] sm:$0x7f] %v895_v5 }
  0x4f   :  { %426 = vst [vmem:[#allocation5 + $0x218] sm:$0x7f] %v898_v6 }
  0x50   :  { %427 = vst [vmem:[#allocation5 + $0x220] sm:$0x7f] %v909_v7 }
  0x51   :  { %428 = vst [vmem:[#allocation5 + $0x228] sm:$0x7f] %v912_v8 }
  0x52   :  { %429 = vst [vmem:[#allocation5 + $0x230] sm:$0x7f] %v915_v9 }
  0x53   :  { %430 = vst [vmem:[#allocation5 + $0x238] sm:$0x7f] %v918_v10 }
  0x54   :  { %431 = vst [vmem:[#allocation5 + $0x240] sm:$0x7f] %v929_v11 }
  0x55   :  { %432 = vst [vmem:[#allocation5 + $0x248] sm:$0x7f] %v932_v12 }
  0x56   :  { %433 = vst [vmem:[#allocation5 + $0x250] sm:$0x7f] %v935_v13 }
  0x57   :  { %434 = vst [vmem:[#allocation5 + $0x258] sm:$0x7f] %v938_v23 }
  0x58   :  { %435 = vst [vmem:[#allocation5 + $0x260] sm:$0x7f] %v949_v24 }
  0x59   :  { %436 = vst [vmem:[#allocation5 + $0x268] sm:$0x7f] %v952_v25 }
  0x5a   :  { %437 = vst [vmem:[#allocation5 + $0x270] sm:$0x7f] %v955_v26 }
  0x5b   :  { %438 = vst [vmem:[#allocation5 + $0x278] sm:$0x7f] %v958_v28 }
  0x5c   :  { %439 = vst [vmem:[#allocation5 + $0x280] sm:$0x7f] %v969_v29 }
  0x5d   :  { %440 = vst [vmem:[#allocation5 + $0x288] sm:$0x7f] %v972_v30 }
  0x5e   :  { %441 = vst [vmem:[#allocation5 + $0x290] sm:$0x7f] %v975_v32 }
  0x5f   :  { %442 = vst [vmem:[#allocation5 + $0x298] sm:$0x7f] %v986_v38 }
  0x60   :  { %443 = vst [vmem:[#allocation5 + $0x2a0] sm:$0x7f] %v997_v42 }
  0x61   :  { %444 = vst [vmem:[#allocation5 + $0x2a8] sm:$0x7f] %v1009_v16 }
  0x62   :  { %445 = vst [vmem:[#allocation5 + $0x2b0] sm:$0x7f] %v1017_v46 }
  0x63   :  { %446 = vst [vmem:[#allocation5 + $0x2b8] sm:$0x7f] %v561_v48 }
  0x64   :  { %447 = vst [vmem:[#allocation5 + $0x2c0] sm:$0x7f] %v562_v20 }
  0x65   :  { %448 = vst [vmem:[#allocation5 + $0x2c8] sm:$0x7f] %v563_v21 }
  0x66   :  { %449 = vst [vmem:[#allocation5 + $0x2d0] sm:$0x7f] %v564_v22 }
  0x67   :  { %450 = vst [vmem:[#allocation5 + $0x2d8] sm:$0x7f] %v565_v27 }
  0x68   :  { %451 = vst [vmem:[#allocation5 + $0x2e0] sm:$0x7f] %v566_v31 }
  0x69   :  { %452 = vst [vmem:[#allocation5 + $0x2e8] sm:$0x7f] %v567_v33 }
  0x6a   :  { %453 = vst [vmem:[#allocation5 + $0x2f0] sm:$0x7f] %v568_v61 }
  0x6b   :  { %454 = vst [vmem:[#allocation5 + $0x2f8] sm:$0x7f] %v569_v34 }
  0x6c   :  { %467 = dma.vmem_to_hbm [thread:$0]  %s460_s11, 12288, %s462_s14, [#allocation4], %s630_s15, %s630_s15, %s631_s16  }
  0x6d   :  { %625 = dma.done.wait [#allocation4], 12288  }
  0x6e   :  { %626 = vsyncadd [#allocation4], 4294955008 }
  0x6f   :  { %472 = vsyncpa [#allocation3], 1 }
  0x70   :  { %473 = vsyncpa [#allocation4], 1 }

</bundles_post_ra>
